<compile_context>
chip_gen: v7x
topology: tpu7x:2x2x1
jax: 0.10.0
libtpu: 0.0.40
codegen_flags: <defaults>
</compile_context>

<pallas_src>
import jax
import jax.numpy as jnp
from jax import lax
from jax.experimental import pallas as pl
from jax.experimental.pallas import tpu as pltpu


def _int_pow(x, e):
    """x**e for a static non-negative int e via exponentiation-by-squaring (VPU only)."""
    acc = None
    base = x
    e = int(e)
    while e > 0:
        if e & 1:
            acc = base if acc is None else acc * base
        e >>= 1
        if e:
            base = base * base
    return jnp.ones_like(x) if acc is None else acc


def _make_focal_kernel(*, gamma, reduction, n, tile_n, has_alpha, lane_dense):
    g = float(gamma)
    int_gamma = (g == int(g)) and (0.0 <= g <= 16.0)

    def kernel(*refs):
        logits_ref, target_ref = refs[0], refs[1]
        if has_alpha:
            alpha_ref, out_ref = refs[2], refs[3]
        else:
            alpha_ref, out_ref = None, refs[2]

        i = pl.program_id(0)

        # f32 math throughout (v5e has no bf16 VPU/EUP); cheap relative to the HBM read.
        logits = logits_ref[...].astype(jnp.float32)            # (tile_n, C)
        tgt = target_ref[...]                                   # (tile_n, 1) int32
        tn, c = logits.shape

        class_ids = lax.broadcasted_iota(jnp.int32, (tn, c), 1)
        is_tgt = class_ids == tgt                               # bool mask, no f32 one-hot

        # Stable log-softmax cross-entropy per row, kept 2-D for vreg layout.
        m = jnp.max(logits, axis=-1, keepdims=True)                               # (tile_n, 1)
        lse = m + jnp.log(jnp.sum(jnp.exp(logits - m), axis=-1, keepdims=True))
        tgt_logit = jnp.sum(jnp.where(is_tgt, logits, 0.0), axis=-1, keepdims=True)
        ce = lse - tgt_logit                                                      # (tile_n, 1)

        pt = jnp.exp(-ce)
        omp = jnp.maximum(1.0 - pt, 0.0)   # clamp guards fp noise at ce ~ 0

        if int_gamma:
            focal = ce * _int_pow(omp, int(g))      # pure VPU multiplies, no pow
        else:
            focal = jnp.power(omp, g) * ce

        if has_alpha:
            focal = alpha_ref[...].astype(jnp.float32) * focal   # per-row alpha[target]

        if reduction in ("mean", "sum"):
            # Mask batch-padding rows, emit this tile's partial sum; wrapper finishes.
            row_ids = i * tile_n + lax.broadcasted_iota(jnp.int32, (tn, 1), 0)
            valid = (row_ids < n).astype(jnp.float32)
            tile_sum = jnp.sum(focal * valid, axis=(0, 1), keepdims=True)         # (1, 1)
            out_ref[...] = tile_sum[None]                                         # (1, 1, 1)
        elif lane_dense:
            # Sublane column -> lane row so the store is a wide vst (XLU relayout, free slot).
            focal_row = pltpu.einshape("ab->ba", focal)                           # (1, tile_n)
            out_ref[...] = focal_row[None]                                        # (1, 1, tile_n)
        else:
            out_ref[...] = focal                                                  # (tile_n, 1)

    return kernel


def _pick_tile_n(n, c, itemsize):
    """Rows per tile: ~2 MiB logits block in its own dtype, rounded to the sublane granule."""
    granule = 16 if itemsize <= 2 else 8
    budget_bytes = 2 * 1024 * 1024
    t = budget_bytes // max(1, c * itemsize)
    t = max(granule, (t // granule) * granule)
    n_ceil = ((n + granule - 1) // granule) * granule
    return min(t, n_ceil), granule


def focal_loss(logits, target, gamma=2.0, alpha=None, reduction="mean", tile_n=None):
    """Pallas-backed FocalLoss.forward.

    logits: (N, C) float (float32 or bfloat16 — do NOT pre-cast, kernel upcasts).
    target: (N,) integer class ids.
    """
    n, c = logits.shape
    itemsize = jnp.dtype(logits.dtype).itemsize
    auto_tile, granule = _pick_tile_n(n, c, itemsize)
    if tile_n is None:
        tile_n = auto_tile
    tile_n = max(granule, (int(tile_n) // granule) * granule)

    # VMEM estimate: double-buffered logits block + ~4 f32-sized temporaries + targets + slack.
    block_bytes = tile_n * c * itemsize
    est = 2 * block_bytes + 4 * tile_n * c * 4 + 4 * tile_n * 4 + (2 << 20)
    if est > (48 << 20):
        # TODO(synk): tile the class dim with an online (running max/sum) logsumexp for
        # very large C instead of bailing out.
        raise NotImplementedError(
            f"focal_loss: C={c} needs a class-dim-tiled logsumexp (VMEM estimate {est} B)")
    vmem_limit = min(48 << 20, max(32 << 20, 2 * est))   # safe inside v7x's 64 MiB VMEM

    grid = pl.cdiv(n, tile_n)
    n_pad = grid * tile_n
    if n_pad != n:
        logits = jnp.pad(logits, ((0, n_pad - n), (0, 0)))
        target = jnp.pad(target, ((0, n_pad - n),))
    tgt2d = target.astype(jnp.int32).reshape(n_pad, 1)

    has_alpha = alpha is not None
    inputs = [logits, tgt2d]
    in_specs = [
        pl.BlockSpec((tile_n, c), lambda i: (i, 0)),    # logits tile (auto double-buffered)
        pl.BlockSpec((tile_n, 1), lambda i: (i, 0)),    # target tile
    ]
    if has_alpha:
        # Per-row alpha[target]: one tiny (N,) XLA gather, streamed per tile as (tile_n, 1).
        alpha_t = jnp.asarray(alpha, jnp.float32)[target.astype(jnp.int32)].reshape(n_pad, 1)
        inputs.append(alpha_t)
        in_specs.append(pl.BlockSpec((tile_n, 1), lambda i: (i, 0)))

    def run(lane_dense):
        if reduction in ("mean", "sum"):
            out_shape = jax.ShapeDtypeStruct((grid, 1, 1), jnp.float32)
            out_specs = pl.BlockSpec((1, 1, 1), lambda i: (i, 0, 0))
        elif lane_dense:
            out_shape = jax.ShapeDtypeStruct((grid, 1, tile_n), jnp.float32)
            out_specs = pl.BlockSpec((1, 1, tile_n), lambda i: (i, 0, 0))
        else:
            out_shape = jax.ShapeDtypeStruct((n_pad, 1), jnp.float32)
            out_specs = pl.BlockSpec((tile_n, 1), lambda i: (i, 0))
        kernel = _make_focal_kernel(gamma=gamma, reduction=reduction, n=n,
                                    tile_n=tile_n, has_alpha=has_alpha,
                                    lane_dense=lane_dense)
        return pl.pallas_call(
            kernel,
            out_shape=out_shape,
            grid_spec=pltpu.PrefetchScalarGridSpec(
                num_scalar_prefetch=0,
                grid=(grid,),
                in_specs=in_specs,
                out_specs=out_specs,
            ),
            compiler_params=pltpu.CompilerParams(
                dimension_semantics=("parallel",),   # no cross-tile state -> megacore-friendly
                vmem_limit_bytes=vmem_limit,
            ),
        )(*inputs)

    if reduction in ("mean", "sum"):
        partial = run(lane_dense=False)            # (grid, 1, 1) per-tile partial sums
        total = jnp.sum(partial)                   # tiny finish in XLA
        if reduction == "mean":
            total = total / jnp.float32(n)
        return total

    # reduction == 'none'
    try:
        out = run(lane_dense=True)                 # lane-dense stores (preferred)
        return out.reshape(n_pad)[:n]
    except Exception:
        # Sublane->lane relayout unsupported by this Mosaic build: proven column fallback.
        out = run(lane_dense=False)
        return out[:n, 0]


def _focal_loss_ref(logits, target, gamma=2.0, alpha=None, reduction="mean"):
    """Pure-JAX reference mirroring the F.cross_entropy-based FocalLoss."""
    logits = logits.astype(jnp.float32)
    logp = jax.nn.log_softmax(logits, axis=-1)
    ce = -jnp.take_along_axis(logp, target[:, None].astype(jnp.int32), axis=-1)[:, 0]
    pt = jnp.exp(-ce)
    focal = (1.0 - pt) ** gamma * ce
    if alpha is not None:
        focal = jnp.asarray(alpha, jnp.float32)[target] * focal
    if reduction == "mean":
        return focal.mean()
    if reduction == "sum":
        return focal.sum()
    return focal


if __name__ == "__main__":
    key = jax.random.PRNGKey(0)
    k1, k2, k3, k4, k5 = jax.random.split(key, 5)

    # Small shapes consistent with the module: batch=8, classes=32.
    N, C = 8, 32
    logits = jax.random.normal(k1, (N, C), dtype=jnp.float32) * 2.0
    target = jax.random.randint(k2, (N,), 0, C, dtype=jnp.int32)
    alpha_w = jax.random.uniform(k3, (C,), dtype=jnp.float32) + 0.5

    # Default module config: gamma=2.0, alpha=None, reduction='mean'
    out_mean = focal_loss(logits, target, gamma=2.0, alpha=None, reduction="mean")
    jax.block_until_ready(out_mean)
    ref_mean = _focal_loss_ref(logits, target, gamma=2.0, alpha=None, reduction="mean")
    assert jnp.allclose(out_mean, ref_mean, atol=1e-5, rtol=1e-5), (out_mean, ref_mean)

    # alpha weighting + 'sum' and 'none' reductions.
    out_sum = focal_loss(logits, target, gamma=2.0, alpha=alpha_w, reduction="sum")
    ref_sum = _focal_loss_ref(logits, target, gamma=2.0, alpha=alpha_w, reduction="sum")
    assert jnp.allclose(out_sum, ref_sum, atol=1e-4, rtol=1e-5), (out_sum, ref_sum)

    out_none = focal_loss(logits, target, gamma=2.0, alpha=alpha_w, reduction="none")
    ref_none = _focal_loss_ref(logits, target, gamma=2.0, alpha=alpha_w, reduction="none")
    assert out_none.shape == (N,)
    assert jnp.allclose(out_none, ref_none, atol=1e-5, rtol=1e-5)

    # Multi-tile grid + batch padding + partial-sum reduction (N not a multiple of tile_n).
    N2, C2 = 50, 16
    logits2 = jax.random.normal(k4, (N2, C2), dtype=jnp.float32)
    target2 = jax.random.randint(k5, (N2,), 0, C2, dtype=jnp.int32)
    out2 = focal_loss(logits2, target2, gamma=2.0, alpha=None, reduction="mean", tile_n=16)
    ref2 = _focal_loss_ref(logits2, target2, gamma=2.0, alpha=None, reduction="mean")
    assert jnp.allclose(out2, ref2, atol=1e-5, rtol=1e-5), (out2, ref2)

    out2n = focal_loss(logits2, target2, gamma=2.0, alpha=None, reduction="none", tile_n=16)
    ref2n = _focal_loss_ref(logits2, target2, gamma=2.0, alpha=None, reduction="none")
    assert out2n.shape == (N2,)
    assert jnp.allclose(out2n, ref2n, atol=1e-5, rtol=1e-5)

    # bf16 logits accepted directly (no wrapper pre-cast; kernel upcasts to f32).
    logits_bf16 = logits.astype(jnp.bfloat16)
    out_bf = focal_loss(logits_bf16, target, gamma=2.0, alpha=None, reduction="mean")
    ref_bf = _focal_loss_ref(logits_bf16, target, gamma=2.0, alpha=None, reduction="mean")
    assert jnp.allclose(out_bf, ref_bf, atol=1e-5, rtol=1e-5), (out_bf, ref_bf)

    # Non-integer gamma exercises the jnp.power fallback path.
    out_g = focal_loss(logits, target, gamma=1.5, alpha=None, reduction="sum")
    ref_g = _focal_loss_ref(logits, target, gamma=1.5, alpha=None, reduction="sum")
    assert jnp.allclose(out_g, ref_g, atol=1e-4, rtol=1e-5), (out_g, ref_g)

    jax.block_until_ready(out_none)
    print("KERNEL_OK")
</pallas_src>

<mosaic_0001>
module attributes {stable_mosaic.version = 11 : i64} {
  func.func @kernel(%arg0: i32, %arg1: memref<8x32xf32, #tpu.memory_space<vmem>>, %arg2: memref<8x1xi32, #tpu.memory_space<vmem>>, %arg3: memref<1x1x1xf32, #tpu.memory_space<vmem>>) attributes {dimension_semantics = [#tpu.dimension_semantics<parallel>], iteration_bounds = array<i64: 1>, scalar_prefetch = 0 : i64, scratch_operands = 0 : i64, tpu.core_type = #tpu.core_type<tc>, window_params = [{transform_indices = @transform_0, window_bounds = array<i64: 8, 32>}, {transform_indices = @transform_1, window_bounds = array<i64: 8, 1>}, {transform_indices = @transform_2, window_bounds = array<i64: 1, 1, 1>}]} {
    %c0 = arith.constant 0 : index
    %c0_0 = arith.constant 0 : index
    %0 = vector.load %arg1[%c0, %c0_0] : memref<8x32xf32, #tpu.memory_space<vmem>>, vector<8x32xf32>
    %c0_1 = arith.constant 0 : index
    %c0_2 = arith.constant 0 : index
    %1 = vector.load %arg2[%c0_1, %c0_2] : memref<8x1xi32, #tpu.memory_space<vmem>>, vector<8x1xi32>
    %2 = tpu.iota {dimensions = array<i32: 1>} : vector<8x32xi32>
    %3 = vector.broadcast %1 : vector<8x1xi32> to vector<8x32xi32>
    %4 = arith.cmpi eq, %2, %3 : vector<8x32xi32>
    %cst = arith.constant dense<0xFF800000> : vector<8xf32>
    %5 = vector.multi_reduction <maximumf>, %0, %cst [1] : vector<8x32xf32> to vector<8xf32>
    %6 = vector.shape_cast %5 : vector<8xf32> to vector<8x1xf32>
    %7 = vector.broadcast %6 : vector<8x1xf32> to vector<8x32xf32>
    %8 = arith.subf %0, %7 : vector<8x32xf32>
    %9 = math.exp %8 : vector<8x32xf32>
    %cst_3 = arith.constant dense<0.000000e+00> : vector<8xf32>
    %10 = vector.multi_reduction <add>, %9, %cst_3 [1] : vector<8x32xf32> to vector<8xf32>
    %11 = vector.shape_cast %10 : vector<8xf32> to vector<8x1xf32>
    %12 = math.log %11 : vector<8x1xf32>
    %13 = arith.addf %6, %12 : vector<8x1xf32>
    %cst_4 = arith.constant 0.000000e+00 : f32
    %14 = vector.broadcast %cst_4 : f32 to vector<8x32xf32>
    %15 = arith.select %4, %0, %14 : vector<8x32xi1>, vector<8x32xf32>
    %cst_5 = arith.constant dense<0.000000e+00> : vector<8xf32>
    %16 = vector.multi_reduction <add>, %15, %cst_5 [1] : vector<8x32xf32> to vector<8xf32>
    %17 = vector.shape_cast %16 : vector<8xf32> to vector<8x1xf32>
    %18 = arith.subf %13, %17 : vector<8x1xf32>
    %cst_6 = arith.constant 0.000000e+00 : f32
    %19 = vector.broadcast %cst_6 : f32 to vector<8x1xf32>
    %20 = arith.subf %19, %18 : vector<8x1xf32>
    %21 = math.exp %20 : vector<8x1xf32>
    %cst_7 = arith.constant 1.000000e+00 : f32
    %22 = vector.broadcast %cst_7 : f32 to vector<8x1xf32>
    %23 = arith.subf %22, %21 : vector<8x1xf32>
    %cst_8 = arith.constant 0.000000e+00 : f32
    %24 = vector.broadcast %cst_8 : f32 to vector<8x1xf32>
    %25 = arith.maximumf %23, %24 : vector<8x1xf32>
    %26 = arith.mulf %25, %25 : vector<8x1xf32>
    %27 = arith.mulf %18, %26 : vector<8x1xf32>
    %c8_i32 = arith.constant 8 : i32
    %28 = arith.muli %arg0, %c8_i32 : i32
    %29 = tpu.iota {dimensions = array<i32: 0>} : vector<8x1xi32>
    %30 = vector.broadcast %28 : i32 to vector<8x1xi32>
    %31 = arith.addi %30, %29 : vector<8x1xi32>
    %c8_i32_9 = arith.constant 8 : i32
    %32 = vector.broadcast %c8_i32_9 : i32 to vector<8x1xi32>
    %33 = arith.cmpi slt, %31, %32 : vector<8x1xi32>
    %34 = arith.extui %33 : vector<8x1xi1> to vector<8x1xi32>
    %35 = arith.sitofp %34 : vector<8x1xi32> to vector<8x1xf32>
    %36 = arith.mulf %27, %35 : vector<8x1xf32>
    %37 = vector.shape_cast %36 : vector<8x1xf32> to vector<1x8x1xf32>
    %cst_10 = arith.constant dense<0.000000e+00> : vector<1xf32>
    %38 = vector.multi_reduction <add>, %37, %cst_10 [1, 2] : vector<1x8x1xf32> to vector<1xf32>
    %39 = vector.shape_cast %38 : vector<1xf32> to vector<1x1x1xf32>
    %40 = vector.extract %39[0, 0, 0] : f32 from vector<1x1x1xf32>
    %41 = vector.broadcast %40 : f32 to vector<1x1xf32>
    %42 = vector.shape_cast %41 : vector<1x1xf32> to vector<1x1x1xf32>
    %c0_11 = arith.constant 0 : index
    %c0_12 = arith.constant 0 : index
    %c0_13 = arith.constant 0 : index
    %43 = vector.load %arg3[%c0_11, %c0_12, %c0_13] : memref<1x1x1xf32, #tpu.memory_space<vmem>>, vector<1x1x1xf32>
    tpu.vector_store %arg3[%c0_11, %c0_12, %c0_13], %42 {strides = array<i32>} : memref<1x1x1xf32, #tpu.memory_space<vmem>>, vector<1x1x1xf32>,
    return
  }
  func.func @transform_0(%arg0: i32) -> (i32, i32) {
    %c0_i32 = arith.constant 0 : i32
    %c0_i32_0 = arith.constant 0 : i32
    return %arg0, %c0_i32 : i32, i32
  }
  func.func @transform_1(%arg0: i32) -> (i32, i32) {
    %c0_i32 = arith.constant 0 : i32
    %c0_i32_0 = arith.constant 0 : i32
    return %arg0, %c0_i32 : i32, i32
  }
  func.func @transform_2(%arg0: i32) -> (i32, i32, i32) {
    %c0_i32 = arith.constant 0 : i32
    %c0_i32_0 = arith.constant 0 : i32
    %c0_i32_1 = arith.constant 0 : i32
    return %arg0, %c0_i32, %c0_i32_0 : i32, i32, i32
  }
}

</mosaic_0001>

<bundles_post_ra>
// kernel: tpu_custom_call.1
= control target key start
LH: loop header
LB: loop body
LE: loop exit
PB: predicated region body
PF: predicated region fallthrough
CT: control target
= control target key end

     0   :  { %vm20_vm0 = vcmask 261120   ;;  %s155_s0 = inlined_call_operand.vmem [shape: f32[8,32], index: 0, kind: input, shape index: {}]   ;;  %s156_s1 = inlined_call_operand.vmem [shape: s32[8,1], index: 1, kind: input, shape index: {}]   ;;  %s157_s2 = inlined_call_operand.hbm [shape: f32[1,1,1], index: 2, kind: output, shape index: {}]  }
   0x1   :  { %v12_v0 = vld [vmem:[%s155_s0] sm:$0xff] }
   0x2   :  { %7 = vsyncpa [#allocation3], 0  ;;  %v21_v1 = vsel %vm20_vm0, %v12_v0, -inf  ;;  %v117_v2 = vmov 0   ;;  %v13_v3 = vld [vmem:[%s156_s1] sm:$0xff]  ;;  %v14_v7 = vlaneseq  ;;  %vm54_vm2 = vcmask 7168  }
   0x3   :  { %86 = vset.pattern.permute.xlu0 %v117_v2  ;;  %s118_s0 = smov [#allocation2]   ;;  %vm66_vm3 = vcmask 0  }
   0x4   :  { %22 = vmax.xlane.f32.xlu0 %v21_v1  ;;  %v15_v8 = vand.u32 127, %v14_v7  ;;  %s74_s1 = sshll.u32 %s118_s0, 4  ;;  %s75_s1 = int_to_ptr.vmem [resolvable:$true] %s74_s1 }
   0x5   :  { %s93_s14 = scalar_lea.vmem %s75_s1, 16  ;;  %s97_s15 = scalar_lea.vmem %s75_s1, 32 }
   0x6   :  { %p94_p0 = scmp.ne.s32.totalorder %s75_s1, %s93_s14  ;;  %p98_p1 = scmp.lt.s32.totalorder %s75_s1, %s75_s1 }
   0x7   :  { %p99_p2 = scmp.lt.s32.totalorder %s97_s15, %s93_s14 }
   0x9   :  { %p100_p3 = por %p99_p2, %p98_p1 }
   0xb   :  { %p101_p4 = pnand %p100_p3, %p94_p0 }
  0x1a   :  { %17 = vperm.xlu0 %86, %v13_v3  }
  0x91   :  { %v23_v4 = vpop.xlane.xlu0 %22 }
  0x92   :  { %v24_v5 = vsub.f32 %v12_v0, %v23_v4 }
  0x94   :  { %v25_v6 = vmul.f32 1.442695, %v24_v5 }
  0x96   :  { %87 = vpow2.f32 %v25_v6 }
  0x99   :  { %v18_v9 = vpop.permute.xlu0 %17 }
  0x9a   :  { %vm19_vm1 = vcmp.eq.s32.totalorder %v15_v8, %v18_v9 }
  0x9b   :  { %v33_v11 = vsel %vm19_vm1, %v12_v0, 0.0 }
  0x9c   :  { %v34_v13 = vsel %vm20_vm0, %v33_v11, 0.0 }
  0xa0   :  { %v88_v10 = vpop.eup %87 }
  0xa1   :  { %v27_v12 = vsel %vm20_vm0, %v88_v10, 0.0 }
  0xa2   :  { %28 = vadd.xlane.f32.xlu1 %v27_v12 }
  0xa6   :  { %35 = vadd.xlane.f32.xlu1 %v34_v13 }
 0x12f   :  { %v29_v14 = vpop.xlane.xlu1 %28 }
 0x130   :  { %89 = vlog2.f32 %v29_v14 }
 0x133   :  { %v36_v17 = vpop.xlane.xlu1 %35 }
 0x13a   :  { %v90_v15 = vpop.eup %89 }
 0x13b   :  { %v31_v16 = vmul.f32 0.6931472, %v90_v15 }
 0x13d   :  { %v32_v18 = vadd.f32 %v31_v16, %v23_v4 }
 0x13f   :  { %v37_v19 = vsub.f32 %v32_v18, %v36_v17 }
 0x141   :  { %v38_v20 = vsub.f32 0.0, %v37_v19 }
 0x143   :  { %v39_v21 = vmul.f32 1.442695, %v38_v20 }
 0x145   :  { %91 = vpow2.f32 %v39_v21 }
 0x14f   :  { %v92_v22 = vpop.eup %91 }
 0x150   :  { %v41_v23 = vsub.f32 1.0, %v92_v22 }
 0x152   :  { %v42_v24 = vmax.f32 %v41_v23, 0.0 }
 0x154   :  { %v43_v25 = vmul.f32 %v42_v24, %v42_v24 }
 0x156   :  { %v44_v26 = vmul.f32 %v43_v25, %v37_v19 }
 0x158   :  { %v55_v27 = vsel %vm54_vm2, %v44_v26, 0.0 }
 0x159   :  { %56 = vadd.xlane.f32.xlu1 %v55_v27 }
 0x1e6   :  { %v57_v28 = vpop.xlane.xlu1 %56 }
 0x1e7   :  { %v58_v29 = vrot.slane %v57_v28, 4 }
 0x1e9   :  { %v59_v30 = vadd.f32 %v58_v29, %v57_v28 }
 0x1eb   :  { %v60_v31 = vrot.slane %v59_v30, 2 }
 0x1ed   :  { %v61_v32 = vadd.f32 %v60_v31, %v59_v30 }
 0x1ef   :  { %v62_v33 = vrot.slane %v61_v32, 1 }
 0x1f1   :  { %v63_v34 = vadd.f32 %v62_v33, %v61_v32 }
 0x1f3   :  { %82 = vpush %v63_v34 }
 0x224   :  { %s83_s13 = spop %82 }
 0x225   :  { %v65_v35 = vstv %s83_s13 }
 0x226   :  { %67 = vst.msk [vmem:[#allocation2] sm:$0x1] %vm66_vm3, %v65_v35 }
 0x227   :  { %104 = shalt.err (!%p101_p4)
}
 0x228   :  { %s105_s18 = scalar_lea.hbm %s157_s2, 16 }
 0x229   :  { %p106_p5 = scmp.ne.s32.totalorder %s157_s2, %s105_s18  ;;  %p109_p6 = scmp.lt.u32.totalorder %s105_s18, %s157_s2 }
 0x22b   :  { %p111_p7 = pnand %p109_p6, %p106_p5 }
 0x22d   :  { %114 = shalt.err (!%p111_p7)
}
 0x22e   :  { %77 = dma.vmem_to_hbm [thread:$0]  %s75_s1, 16, %s157_s2, [#allocation3]  }
 0x22f   :  { %115 = dma.done.wait [#allocation3], 16  }
 0x230   :  { %116 = vsyncadd [#allocation3], 4294967280 }
 0x231   :  { %81 = vsyncpa [#allocation3], 1 }

</bundles_post_ra>
